<compile_context>
chip_gen: v5e
topology: v5e:2x2
jax: 0.10.0
libtpu: 0.0.40
codegen_flags: <defaults>
</compile_context>

<pallas_src>
import functools

import jax
import jax.numpy as jnp
from jax.experimental import pallas as pl
from jax.experimental.pallas import tpu as pltpu


# Large finite negative used for masking (no -inf arithmetic / NaN risk).
MASK_VALUE = -0.7 * float(jnp.finfo(jnp.float32).max)
_STAT_LANES = 128  # lane-dense running-max / running-sum scratch width


def _default_vmem_limit():
    """Generation-aware VMEM budget (v5e/v6e: ~96 MiB, v7x: ~48 MiB)."""
    fallback = 48 * 1024 * 1024
    try:
        cap = pltpu.get_tpu_info().vmem_capacity_bytes
        return int(min(max(cap * 0.75, 32 * 1024 * 1024), 100 * 1024 * 1024))
    except Exception:
        return fallback


def _pick_attn_tile(S, window_size, batch):
    """Window-aware query/KV tile (multiple of 128), with a megacore guard."""
    # TODO(synk): pad S up to a multiple of 128 (and mask the tail) instead of
    # falling back to a single full-S tile for ragged sequence lengths.
    cands = [t for t in (256, 128) if S % t == 0]
    if not cands:
        return S
    # Small windows waste most of a 256-wide KV tile on masked columns.
    pref = 128 if window_size <= 256 else 256
    t = pref if pref in cands else cands[0]
    # v7x has 2 TensorCores: make sure there are >=2 parallel (b, q-tile) steps.
    if batch * (S // t) < 2:
        t = cands[-1]
    return t


def _pick_proj_tile(S, batch):
    """Sequence tile for the projection kernels (bigger is better)."""
    cands = [t for t in (512, 256, 128) if S % t == 0]
    if not cands:
        return S
    for t in cands:
        if batch * (S // t) >= 2:
            return t
    return cands[-1]


# ----------------------------------------------------------------------------
# Fused QKV projection: y = x @ [Wq*scale | Wk | Wv] + b, emitted already
# split per head as Q/K/V with shape (B, H, S, hd) -- no wrapper transposes.
# ----------------------------------------------------------------------------
def _qkv_proj_kernel(x_ref, w_ref, b_ref, q_ref, k_ref, v_ref,
                     *, d_model, num_heads, head_dim):
    x = x_ref[0]                                                # (TS, D)
    y = jnp.dot(x, w_ref[...], preferred_element_type=jnp.float32)
    y = y + b_ref[...]                                          # (TS, 3D) f32
    for part, out_ref in enumerate((q_ref, k_ref, v_ref)):
        base = part * d_model
        for h in range(num_heads):                              # static loop
            lo = base + h * head_dim
            out_ref[0, h] = y[:, lo:lo + head_dim].astype(out_ref.dtype)


def _qkv_proj(x, w_qkv, b_qkv, *, num_heads, head_dim, seq_tile, out_dtype,
              vmem_limit):
    B, S, D = x.shape
    n_s = S // seq_tile
    kernel = functools.partial(_qkv_proj_kernel, d_model=D,
                               num_heads=num_heads, head_dim=head_dim)
    hs_shape = jax.ShapeDtypeStruct((B, num_heads, S, head_dim), out_dtype)
    hs_spec = pl.BlockSpec((1, num_heads, seq_tile, head_dim),
                           lambda b, si: (b, 0, si, 0))
    return pl.pallas_call(
        kernel,
        out_shape=(hs_shape, hs_shape, hs_shape),
        grid=(B, n_s),
        in_specs=[
            pl.BlockSpec((1, seq_tile, D), lambda b, si: (b, si, 0)),
            # Constant index map -> the fused (D, 3D) weight is DMA'd once.
            # TODO(synk): for very large d_model (>~2k on v7x's 64 MiB VMEM)
            # stream the weight in head-group column tiles instead.
            pl.BlockSpec((D, 3 * D), lambda b, si: (0, 0)),
            pl.BlockSpec((1, 3 * D), lambda b, si: (0, 0)),
        ],
        out_specs=(hs_spec, hs_spec, hs_spec),
        compiler_params=pltpu.CompilerParams(
            dimension_semantics=("parallel", "parallel"),
            vmem_limit_bytes=vmem_limit),
    )(x, w_qkv, b_qkv)


# ----------------------------------------------------------------------------
# Generic linear: y = x @ W + b   (used for out_proj)
# ----------------------------------------------------------------------------
def _linear_kernel(x_ref, w_ref, b_ref, o_ref):
    y = jnp.dot(x_ref[0], w_ref[...], preferred_element_type=jnp.float32)
    o_ref[0] = (y + b_ref[...]).astype(o_ref.dtype)


def _linear(x, w, b, *, out_dtype, seq_tile, vmem_limit):
    B, S, Din = x.shape
    Dout = w.shape[1]
    n_s = S // seq_tile
    return pl.pallas_call(
        _linear_kernel,
        out_shape=jax.ShapeDtypeStruct((B, S, Dout), out_dtype),
        grid=(B, n_s),
        in_specs=[
            pl.BlockSpec((1, seq_tile, Din), lambda b, si: (b, si, 0)),
            pl.BlockSpec((Din, Dout), lambda b, si: (0, 0)),
            pl.BlockSpec((1, Dout), lambda b, si: (0, 0)),
        ],
        out_specs=pl.BlockSpec((1, seq_tile, Dout), lambda b, si: (b, si, 0)),
        compiler_params=pltpu.CompilerParams(
            dimension_semantics=("parallel", "parallel"),
            vmem_limit_bytes=vmem_limit),
    )(x, w, b)


# ----------------------------------------------------------------------------
# Flash-style sliding-window attention (band-only KV loop, online softmax).
# Output context is written directly as lane-dense (B, S, D).
# ----------------------------------------------------------------------------
def _flash_swa_kernel(q_ref, k_ref, v_ref, o_ref, lse_ref,
                      m_sc, l_sc, acc_sc,
                      *, q_tile, kv_tile, window_size, band_tiles,
                      num_heads, head_dim):
    qi = pl.program_id(1)
    ki = pl.program_id(2)

    @pl.when(ki == 0)
    def _():
        m_sc[...] = jnp.full(m_sc.shape, MASK_VALUE, jnp.float32)
        l_sc[...] = jnp.zeros(l_sc.shape, jnp.float32)
        acc_sc[...] = jnp.zeros(acc_sc.shape, jnp.float32)

    r = q_tile // kv_tile
    diag_tile = (qi + 1) * r - 1
    start_tile = jnp.maximum(diag_tile + 1 - band_tiles, 0)
    in_band = start_tile + ki <= diag_tile
    kv_idx = jnp.minimum(start_tile + ki, diag_tile)   # mirrors kv_index()

    row0 = qi * q_tile
    col0 = kv_idx * kv_tile
    # Tile fully inside the causal sliding-window band -> mask-free fast path.
    fully_inside = jnp.logical_and(
        col0 + kv_tile - 1 <= row0,
        col0 > row0 + q_tile - 1 - window_size)

    def scores():
        return jnp.einsum("hqd,hkd->hqk", q_ref[0], k_ref[0],
                          preferred_element_type=jnp.float32)

    def update(s, allowed):
        m_prev = m_sc[...]                                  # (H, TQ, LANES)
        l_prev = l_sc[...]
        m_prev_c = m_prev[:, :, 0:1]                        # (H, TQ, 1)
        m_curr = jnp.max(s, axis=-1, keepdims=True)         # (H, TQ, 1)
        m_next_c = jnp.maximum(m_prev_c, m_curr)            # (H, TQ, 1)
        alpha = jnp.exp(m_prev_c - m_next_c)                # (H, TQ, 1)
        p = jnp.exp(s - m_next_c)                           # (H, TQ, TK) f32
        if allowed is not None:
            # Explicitly zero masked entries: no reliance on exp underflow.
            p = jnp.where(allowed[None, :, :], p, 0.0)
        l_sc[...] = alpha * l_prev + jnp.sum(p, axis=-1, keepdims=True)
        acc_sc[...] = alpha * acc_sc[...] + jnp.einsum(
            "hqk,hkd->hqd", p.astype(v_ref.dtype), v_ref[0],
            preferred_element_type=jnp.float32)
        m_sc[...] = jnp.maximum(m_prev, m_curr)             # lane-dense store

    @pl.when(jnp.logical_and(in_band, fully_inside))
    def _():
        update(scores(), None)

    @pl.when(jnp.logical_and(in_band, jnp.logical_not(fully_inside)))
    def _():
        row = row0 + jax.lax.broadcasted_iota(jnp.int32, (q_tile, kv_tile), 0)
        col = col0 + jax.lax.broadcasted_iota(jnp.int32, (q_tile, kv_tile), 1)
        allowed = jnp.logical_and(col <= row, col > row - window_size)
        s = jnp.where(allowed[None, :, :], scores(), MASK_VALUE)
        update(s, allowed)

    @pl.when(ki == band_tiles - 1)
    def _():
        l = l_sc[...][:, :, 0:1]                            # (H, TQ, 1)
        m = m_sc[...][:, :, 0:1]
        ctx = acc_sc[...] / l                               # exact normalize
        for h in range(num_heads):                          # lane-dense (B,S,D)
            lo = h * head_dim
            o_ref[0, :, lo:lo + head_dim] = ctx[h].astype(o_ref.dtype)
        lse_ref[0] = m + jnp.log(l)


def _flash_swa(q, k, v, *, window_size, q_tile, kv_tile, d_model, out_dtype,
               vmem_limit):
    B, H, S, hd = q.shape
    n_q = S // q_tile
    n_kv = S // kv_tile
    r = q_tile // kv_tile
    band_tiles = min(r + pl.cdiv(max(window_size - 1, 0), kv_tile), n_kv)
    band_tiles = max(band_tiles, 1)

    def q_index(b, qi, ki):
        return (b, 0, qi, 0)

    def kv_index(b, qi, ki):
        diag = (qi + 1) * r - 1
        start = jnp.maximum(diag + 1 - band_tiles, 0)
        # Out-of-band trailing steps clamp onto the (already resident)
        # diagonal block -> no extra DMA for skipped iterations.
        return (b, 0, jnp.minimum(start + ki, diag), 0)

    kernel = functools.partial(
        _flash_swa_kernel, q_tile=q_tile, kv_tile=kv_tile,
        window_size=window_size, band_tiles=band_tiles,
        num_heads=H, head_dim=hd)

    return pl.pallas_call(
        kernel,
        out_shape=(jax.ShapeDtypeStruct((B, S, d_model), out_dtype),
                   jax.ShapeDtypeStruct((B, H, S, 1), jnp.float32)),
        grid=(B, n_q, band_tiles),
        in_specs=[
            pl.BlockSpec((1, H, q_tile, hd), q_index),
            pl.BlockSpec((1, H, kv_tile, hd), kv_index),
            pl.BlockSpec((1, H, kv_tile, hd), kv_index),
        ],
        out_specs=(
            pl.BlockSpec((1, q_tile, d_model), lambda b, qi, ki: (b, qi, 0)),
            pl.BlockSpec((1, H, q_tile, 1), q_index)),
        scratch_shapes=[
            pltpu.VMEM((H, q_tile, _STAT_LANES), jnp.float32),  # running max
            pltpu.VMEM((H, q_tile, _STAT_LANES), jnp.float32),  # running sum
            pltpu.VMEM((H, q_tile, hd), jnp.float32),           # accumulator
        ],
        compiler_params=pltpu.CompilerParams(
            dimension_semantics=("parallel", "parallel", "arbitrary"),
            vmem_limit_bytes=vmem_limit),
    )(q, k, v)


# ----------------------------------------------------------------------------
# Optional: reconstruct full (B, H, S, S) attention weights from the LSE stats.
# Only band tiles do MXU work; out-of-band tiles just store zeros (lane-dense).
# ----------------------------------------------------------------------------
def _attn_weights_kernel(q_ref, k_ref, lse_ref, attn_ref,
                         *, q_tile, kv_tile, window_size):
    qi = pl.program_id(1)
    ki = pl.program_id(2)
    row0 = qi * q_tile
    col0 = ki * kv_tile
    in_band = jnp.logical_and(col0 <= row0 + q_tile - 1,
                              col0 + kv_tile - 1 > row0 - window_size)

    @pl.when(in_band)
    def _():
        row = row0 + jax.lax.broadcasted_iota(jnp.int32, (q_tile, kv_tile), 0)
        col = col0 + jax.lax.broadcasted_iota(jnp.int32, (q_tile, kv_tile), 1)
        allowed = jnp.logical_and(col <= row, col > row - window_size)
        s = jnp.einsum("hqd,hkd->hqk", q_ref[0], k_ref[0],
                       preferred_element_type=jnp.float32)
        p = jnp.exp(s - lse_ref[0])                           # exact softmax
        attn_ref[0] = jnp.where(allowed[None, :, :], p, 0.0).astype(attn_ref.dtype)

    @pl.when(jnp.logical_not(in_band))
    def _():
        attn_ref[...] = jnp.zeros(attn_ref.shape, attn_ref.dtype)


def _attn_weights(q, k, lse, *, window_size, q_tile, kv_tile, attn_dtype,
                  vmem_limit):
    B, H, S, hd = q.shape
    n_q = S // q_tile
    n_kv = S // kv_tile

    def q_index(b, qi, ki):
        return (b, 0, qi, 0)

    def k_index(b, qi, ki):
        # Clamp out-of-band steps onto a band-edge block that is already
        # resident, skipping the DMA for tiles that only write zeros.
        lo = jnp.maximum(qi * q_tile - (window_size - 1), 0) // kv_tile
        hi = ((qi + 1) * q_tile - 1) // kv_tile
        return (b, 0, jnp.clip(ki, lo, hi), 0)

    kernel = functools.partial(_attn_weights_kernel, q_tile=q_tile,
                               kv_tile=kv_tile, window_size=window_size)
    return pl.pallas_call(
        kernel,
        out_shape=jax.ShapeDtypeStruct((B, H, S, S), attn_dtype),
        grid=(B, n_q, n_kv),
        in_specs=[
            pl.BlockSpec((1, H, q_tile, hd), q_index),
            pl.BlockSpec((1, H, kv_tile, hd), k_index),
            pl.BlockSpec((1, H, q_tile, 1), q_index),
        ],
        out_specs=pl.BlockSpec((1, H, q_tile, kv_tile),
                               lambda b, qi, ki: (b, 0, qi, ki)),
        compiler_params=pltpu.CompilerParams(
            dimension_semantics=("parallel", "parallel", "parallel"),
            vmem_limit_bytes=vmem_limit),
    )(q, k, lse)


# ----------------------------------------------------------------------------
# Public entry point (matches PyTorch SlidingWindowAttention.forward, eval mode)
# ----------------------------------------------------------------------------
def sliding_window_attention(x, params, *, num_heads, window_size,
                             compute_dtype=jnp.bfloat16,
                             return_attn_weights=True,
                             attn_weights_dtype=None,
                             q_tile=None,
                             vmem_limit_bytes=None):
    B, S, D = x.shape
    assert D % num_heads == 0
    hd = D // num_heads
    scale = 1.0 / hd ** 0.5
    wq, bq, wk, bk, wv, bv, wo, bo = params

    vmem_limit = (_default_vmem_limit() if vmem_limit_bytes is None
                  else vmem_limit_bytes)
    TQ = _pick_attn_tile(S, window_size, B) if q_tile is None else q_tile
    TK = TQ
    proj_tile = _pick_proj_tile(S, B)

    # Fold 1/sqrt(hd) into the Q projection (zero in-kernel cost), fuse the
    # three projections into one (D, 3D) MXU pass; bf16 weights/activations on
    # the MXU with f32 accumulation.
    w_qkv = jnp.concatenate([wq * scale, wk, wv], axis=1).astype(compute_dtype)
    b_qkv = jnp.concatenate([bq * scale, bk, bv], axis=1).astype(jnp.float32)

    x_c = x.astype(compute_dtype)
    q, k, v = _qkv_proj(x_c, w_qkv, b_qkv, num_heads=num_heads, head_dim=hd,
                        seq_tile=proj_tile, out_dtype=compute_dtype,
                        vmem_limit=vmem_limit)              # each (B, H, S, hd)

    # TODO(synk): nn.Dropout on attention weights omitted (inference/eval mode).
    ctx, lse = _flash_swa(q, k, v, window_size=window_size, q_tile=TQ,
                          kv_tile=TK, d_model=D, out_dtype=compute_dtype,
                          vmem_limit=vmem_limit)            # ctx: (B, S, D)

    out = _linear(ctx, wo.astype(compute_dtype), bo.astype(jnp.float32),
                  out_dtype=x.dtype, seq_tile=proj_tile,
                  vmem_limit=vmem_limit)

    if not return_attn_weights:
        return out

    attn_dtype = compute_dtype if attn_weights_dtype is None else attn_weights_dtype
    attn = _attn_weights(q, k, lse, window_size=window_size, q_tile=TQ,
                         kv_tile=TK, attn_dtype=attn_dtype,
                         vmem_limit=vmem_limit)
    return out, attn


# ----------------------------------------------------------------------------
# Pure-JAX reference mirroring the PyTorch forward (eval mode)
# ----------------------------------------------------------------------------
def _reference(x, params, *, num_heads, window_size):
    B, S, D = x.shape
    hd = D // num_heads
    scale = 1.0 / hd ** 0.5
    wq, bq, wk, bk, wv, bv, wo, bo = params

    def proj(w, b):
        y = x @ w + b
        return y.reshape(B, S, num_heads, hd).transpose(0, 2, 1, 3)

    q, k, v = proj(wq, bq), proj(wk, bk), proj(wv, bv)
    scores = jnp.einsum("bhqd,bhkd->bhqk", q, k) * scale
    i = jnp.arange(S)[:, None]
    j = jnp.arange(S)[None, :]
    allowed = (j <= i) & (j > i - window_size)
    scores = jnp.where(allowed[None, None], scores, -jnp.inf)
    attn = jax.nn.softmax(scores, axis=-1)
    out = jnp.einsum("bhqk,bhkd->bhqd", attn, v)
    out = out.transpose(0, 2, 1, 3).reshape(B, S, D)
    return out @ wo + bo, attn


if __name__ == "__main__":
    def make_params(key, D):
        ks = jax.random.split(key, 8)

        def linear_params(kw, kb):
            w = jax.random.normal(kw, (D, D), dtype=jnp.float32) * 0.05
            b = jax.random.normal(kb, (1, D), dtype=jnp.float32) * 0.02
            return w, b

        wq, bq = linear_params(ks[0], ks[1])
        wk, bk = linear_params(ks[2], ks[3])
        wv, bv = linear_params(ks[4], ks[5])
        wo, bo = linear_params(ks[6], ks[7])
        return (wq, bq, wk, bk, wv, bv, wo, bo)

    # ---- config 1: tiny shapes, single-tile path -----------------------------
    B, S, D = 2, 8, 32
    num_heads, window_size = 4, 4
    key = jax.random.PRNGKey(0)
    kx, kp = jax.random.split(key)
    x = jax.random.normal(kx, (B, S, D), dtype=jnp.float32)
    params = make_params(kp, D)

    ref_out, ref_attn = _reference(x, params, num_heads=num_heads,
                                   window_size=window_size)

    # f32 compute path (tight check)
    out, attn = sliding_window_attention(x, params, num_heads=num_heads,
                                         window_size=window_size,
                                         compute_dtype=jnp.float32)
    jax.block_until_ready((out, attn))
    assert out.shape == (B, S, D)
    assert attn.shape == (B, num_heads, S, S)
    assert jnp.allclose(out, ref_out, atol=2e-3, rtol=2e-3), "out mismatch (f32)"
    assert jnp.allclose(attn, ref_attn, atol=1e-3, rtol=1e-3), "attn mismatch (f32)"

    # default bf16 MXU path (looser check)
    out_bf, attn_bf = sliding_window_attention(x, params, num_heads=num_heads,
                                               window_size=window_size)
    jax.block_until_ready((out_bf, attn_bf))
    assert jnp.allclose(out_bf.astype(jnp.float32), ref_out, atol=3e-2, rtol=3e-2)
    assert jnp.allclose(attn_bf.astype(jnp.float32), ref_attn, atol=3e-2, rtol=3e-2)

    # ---- config 2: exercise multi-tile query / KV-band path ------------------
    B2, S2, D2 = 1, 512, 32
    heads2, win2 = 4, 100
    kx2, kp2 = jax.random.split(jax.random.PRNGKey(1))
    x2 = jax.random.normal(kx2, (B2, S2, D2), dtype=jnp.float32)
    params2 = make_params(kp2, D2)
    ref_out2, ref_attn2 = _reference(x2, params2, num_heads=heads2,
                                     window_size=win2)
    out2, attn2 = sliding_window_attention(x2, params2, num_heads=heads2,
                                           window_size=win2,
                                           compute_dtype=jnp.float32)
    jax.block_until_ready((out2, attn2))
    assert out2.shape == (B2, S2, D2)
    assert attn2.shape == (B2, heads2, S2, S2)
    assert jnp.allclose(out2, ref_out2, atol=2e-3, rtol=2e-3), "out mismatch (cfg2)"
    assert jnp.allclose(attn2, ref_attn2, atol=1e-3, rtol=1e-3), "attn mismatch (cfg2)"

    print("KERNEL_OK")
</pallas_src>

<mosaic_0001>
module attributes {stable_mosaic.version = 11 : i64} {
  func.func @_qkv_proj_kernel(%arg0: i32, %arg1: i32, %arg2: memref<1x8x32xf32, #tpu.memory_space<vmem>>, %arg3: memref<32x96xf32, #tpu.memory_space<vmem>>, %arg4: memref<1x96xf32, #tpu.memory_space<vmem>>, %arg5: memref<1x4x8x8xf32, #tpu.memory_space<vmem>>, %arg6: memref<1x4x8x8xf32, #tpu.memory_space<vmem>>, %arg7: memref<1x4x8x8xf32, #tpu.memory_space<vmem>>) attributes {dimension_semantics = [#tpu.dimension_semantics<parallel>, #tpu.dimension_semantics<parallel>], iteration_bounds = array<i64: 2, 1>, scalar_prefetch = 0 : i64, scratch_operands = 0 : i64, tpu.core_type = #tpu.core_type<tc>, window_params = [{transform_indices = @transform_0, window_bounds = array<i64: 1, 8, 32>}, {pipeline_mode = #tpu.pipeline_mode<synchronous>, transform_indices = @transform_1, window_bounds = array<i64: 32, 96>}, {pipeline_mode = #tpu.pipeline_mode<synchronous>, transform_indices = @transform_2, window_bounds = array<i64: 1, 96>}, {transform_indices = @transform_3, window_bounds = array<i64: 1, 4, 8, 8>}, {transform_indices = @transform_4, window_bounds = array<i64: 1, 4, 8, 8>}, {transform_indices = @transform_5, window_bounds = array<i64: 1, 4, 8, 8>}]} {
    %c0 = arith.constant 0 : index
    %c0_0 = arith.constant 0 : index
    %c0_1 = arith.constant 0 : index
    %0 = vector.load %arg2[%c0, %c0_0, %c0_1] : memref<1x8x32xf32, #tpu.memory_space<vmem>>, vector<1x8x32xf32>
    %1 = vector.shape_cast %0 : vector<1x8x32xf32> to vector<8x32xf32>
    %c0_2 = arith.constant 0 : index
    %c0_3 = arith.constant 0 : index
    %2 = vector.load %arg3[%c0_2, %c0_3] : memref<32x96xf32, #tpu.memory_space<vmem>>, vector<32x96xf32>
    %cst = arith.constant dense<0.000000e+00> : vector<8x96xf32>
    %3 = tpu.matmul %1, %2, %cst {dimension_numbers = #tpu.dot_dimension_numbers<[1], [0], [0], [1], [0, 0, 1, 1], [], []>} : vector<8x32xf32>, vector<32x96xf32>, vector<8x96xf32> -> vector<8x96xf32>
    %c0_4 = arith.constant 0 : index
    %c0_5 = arith.constant 0 : index
    %4 = vector.load %arg4[%c0_4, %c0_5] : memref<1x96xf32, #tpu.memory_space<vmem>>, vector<1x96xf32>
    %5 = vector.broadcast %4 : vector<1x96xf32> to vector<8x96xf32>
    %6 = arith.addf %3, %5 : vector<8x96xf32>
    %7 = vector.extract_strided_slice %6 {offsets = [0, 0], sizes = [8, 8], strides = [1, 1]} : vector<8x96xf32> to vector<8x8xf32>
    %c0_6 = arith.constant 0 : index
    %c0_7 = arith.constant 0 : index
    %c0_8 = arith.constant 0 : index
    %c0_9 = arith.constant 0 : index
    %8 = vector.load %arg5[%c0_6, %c0_7, %c0_8, %c0_9] : memref<1x4x8x8xf32, #tpu.memory_space<vmem>>, vector<1x1x8x8xf32>
    %9 = vector.shape_cast %8 : vector<1x1x8x8xf32> to vector<8x8xf32>
    %10 = vector.shape_cast %7 : vector<8x8xf32> to vector<1x1x8x8xf32>
    tpu.vector_store %arg5[%c0_6, %c0_7, %c0_8, %c0_9], %10 {strides = array<i32>} : memref<1x4x8x8xf32, #tpu.memory_space<vmem>>, vector<1x1x8x8xf32>,
    %11 = vector.extract_strided_slice %6 {offsets = [0, 8], sizes = [8, 8], strides = [1, 1]} : vector<8x96xf32> to vector<8x8xf32>
    %c0_10 = arith.constant 0 : index
    %c1 = arith.constant 1 : index
    %c0_11 = arith.constant 0 : index
    %c0_12 = arith.constant 0 : index
    %12 = vector.load %arg5[%c0_10, %c1, %c0_11, %c0_12] : memref<1x4x8x8xf32, #tpu.memory_space<vmem>>, vector<1x1x8x8xf32>
    %13 = vector.shape_cast %12 : vector<1x1x8x8xf32> to vector<8x8xf32>
    %14 = vector.shape_cast %11 : vector<8x8xf32> to vector<1x1x8x8xf32>
    tpu.vector_store %arg5[%c0_10, %c1, %c0_11, %c0_12], %14 {strides = array<i32>} : memref<1x4x8x8xf32, #tpu.memory_space<vmem>>, vector<1x1x8x8xf32>,
    %15 = vector.extract_strided_slice %6 {offsets = [0, 16], sizes = [8, 8], strides = [1, 1]} : vector<8x96xf32> to vector<8x8xf32>
    %c0_13 = arith.constant 0 : index
    %c2 = arith.constant 2 : index
    %c0_14 = arith.constant 0 : index
    %c0_15 = arith.constant 0 : index
    %16 = vector.load %arg5[%c0_13, %c2, %c0_14, %c0_15] : memref<1x4x8x8xf32, #tpu.memory_space<vmem>>, vector<1x1x8x8xf32>
    %17 = vector.shape_cast %16 : vector<1x1x8x8xf32> to vector<8x8xf32>
    %18 = vector.shape_cast %15 : vector<8x8xf32> to vector<1x1x8x8xf32>
    tpu.vector_store %arg5[%c0_13, %c2, %c0_14, %c0_15], %18 {strides = array<i32>} : memref<1x4x8x8xf32, #tpu.memory_space<vmem>>, vector<1x1x8x8xf32>,
    %19 = vector.extract_strided_slice %6 {offsets = [0, 24], sizes = [8, 8], strides = [1, 1]} : vector<8x96xf32> to vector<8x8xf32>
    %c0_16 = arith.constant 0 : index
    %c3 = arith.constant 3 : index
    %c0_17 = arith.constant 0 : index
    %c0_18 = arith.constant 0 : index
    %20 = vector.load %arg5[%c0_16, %c3, %c0_17, %c0_18] : memref<1x4x8x8xf32, #tpu.memory_space<vmem>>, vector<1x1x8x8xf32>
    %21 = vector.shape_cast %20 : vector<1x1x8x8xf32> to vector<8x8xf32>
    %22 = vector.shape_cast %19 : vector<8x8xf32> to vector<1x1x8x8xf32>
    tpu.vector_store %arg5[%c0_16, %c3, %c0_17, %c0_18], %22 {strides = array<i32>} : memref<1x4x8x8xf32, #tpu.memory_space<vmem>>, vector<1x1x8x8xf32>,
    %23 = vector.extract_strided_slice %6 {offsets = [0, 32], sizes = [8, 8], strides = [1, 1]} : vector<8x96xf32> to vector<8x8xf32>
    %c0_19 = arith.constant 0 : index
    %c0_20 = arith.constant 0 : index
    %c0_21 = arith.constant 0 : index
    %c0_22 = arith.constant 0 : index
    %24 = vector.load %arg6[%c0_19, %c0_20, %c0_21, %c0_22] : memref<1x4x8x8xf32, #tpu.memory_space<vmem>>, vector<1x1x8x8xf32>
    %25 = vector.shape_cast %24 : vector<1x1x8x8xf32> to vector<8x8xf32>
    %26 = vector.shape_cast %23 : vector<8x8xf32> to vector<1x1x8x8xf32>
    tpu.vector_store %arg6[%c0_19, %c0_20, %c0_21, %c0_22], %26 {strides = array<i32>} : memref<1x4x8x8xf32, #tpu.memory_space<vmem>>, vector<1x1x8x8xf32>,
    %27 = vector.extract_strided_slice %6 {offsets = [0, 40], sizes = [8, 8], strides = [1, 1]} : vector<8x96xf32> to vector<8x8xf32>
    %c0_23 = arith.constant 0 : index
    %c1_24 = arith.constant 1 : index
    %c0_25 = arith.constant 0 : index
    %c0_26 = arith.constant 0 : index
    %28 = vector.load %arg6[%c0_23, %c1_24, %c0_25, %c0_26] : memref<1x4x8x8xf32, #tpu.memory_space<vmem>>, vector<1x1x8x8xf32>
    %29 = vector.shape_cast %28 : vector<1x1x8x8xf32> to vector<8x8xf32>
    %30 = vector.shape_cast %27 : vector<8x8xf32> to vector<1x1x8x8xf32>
    tpu.vector_store %arg6[%c0_23, %c1_24, %c0_25, %c0_26], %30 {strides = array<i32>} : memref<1x4x8x8xf32, #tpu.memory_space<vmem>>, vector<1x1x8x8xf32>,
    %31 = vector.extract_strided_slice %6 {offsets = [0, 48], sizes = [8, 8], strides = [1, 1]} : vector<8x96xf32> to vector<8x8xf32>
    %c0_27 = arith.constant 0 : index
    %c2_28 = arith.constant 2 : index
    %c0_29 = arith.constant 0 : index
    %c0_30 = arith.constant 0 : index
    %32 = vector.load %arg6[%c0_27, %c2_28, %c0_29, %c0_30] : memref<1x4x8x8xf32, #tpu.memory_space<vmem>>, vector<1x1x8x8xf32>
    %33 = vector.shape_cast %32 : vector<1x1x8x8xf32> to vector<8x8xf32>
    %34 = vector.shape_cast %31 : vector<8x8xf32> to vector<1x1x8x8xf32>
    tpu.vector_store %arg6[%c0_27, %c2_28, %c0_29, %c0_30], %34 {strides = array<i32>} : memref<1x4x8x8xf32, #tpu.memory_space<vmem>>, vector<1x1x8x8xf32>,
    %35 = vector.extract_strided_slice %6 {offsets = [0, 56], sizes = [8, 8], strides = [1, 1]} : vector<8x96xf32> to vector<8x8xf32>
    %c0_31 = arith.constant 0 : index
    %c3_32 = arith.constant 3 : index
    %c0_33 = arith.constant 0 : index
    %c0_34 = arith.constant 0 : index
    %36 = vector.load %arg6[%c0_31, %c3_32, %c0_33, %c0_34] : memref<1x4x8x8xf32, #tpu.memory_space<vmem>>, vector<1x1x8x8xf32>
    %37 = vector.shape_cast %36 : vector<1x1x8x8xf32> to vector<8x8xf32>
    %38 = vector.shape_cast %35 : vector<8x8xf32> to vector<1x1x8x8xf32>
    tpu.vector_store %arg6[%c0_31, %c3_32, %c0_33, %c0_34], %38 {strides = array<i32>} : memref<1x4x8x8xf32, #tpu.memory_space<vmem>>, vector<1x1x8x8xf32>,
    %39 = vector.extract_strided_slice %6 {offsets = [0, 64], sizes = [8, 8], strides = [1, 1]} : vector<8x96xf32> to vector<8x8xf32>
    %c0_35 = arith.constant 0 : index
    %c0_36 = arith.constant 0 : index
    %c0_37 = arith.constant 0 : index
    %c0_38 = arith.constant 0 : index
    %40 = vector.load %arg7[%c0_35, %c0_36, %c0_37, %c0_38] : memref<1x4x8x8xf32, #tpu.memory_space<vmem>>, vector<1x1x8x8xf32>
    %41 = vector.shape_cast %40 : vector<1x1x8x8xf32> to vector<8x8xf32>
    %42 = vector.shape_cast %39 : vector<8x8xf32> to vector<1x1x8x8xf32>
    tpu.vector_store %arg7[%c0_35, %c0_36, %c0_37, %c0_38], %42 {strides = array<i32>} : memref<1x4x8x8xf32, #tpu.memory_space<vmem>>, vector<1x1x8x8xf32>,
    %43 = vector.extract_strided_slice %6 {offsets = [0, 72], sizes = [8, 8], strides = [1, 1]} : vector<8x96xf32> to vector<8x8xf32>
    %c0_39 = arith.constant 0 : index
    %c1_40 = arith.constant 1 : index
    %c0_41 = arith.constant 0 : index
    %c0_42 = arith.constant 0 : index
    %44 = vector.load %arg7[%c0_39, %c1_40, %c0_41, %c0_42] : memref<1x4x8x8xf32, #tpu.memory_space<vmem>>, vector<1x1x8x8xf32>
    %45 = vector.shape_cast %44 : vector<1x1x8x8xf32> to vector<8x8xf32>
    %46 = vector.shape_cast %43 : vector<8x8xf32> to vector<1x1x8x8xf32>
    tpu.vector_store %arg7[%c0_39, %c1_40, %c0_41, %c0_42], %46 {strides = array<i32>} : memref<1x4x8x8xf32, #tpu.memory_space<vmem>>, vector<1x1x8x8xf32>,
    %47 = vector.extract_strided_slice %6 {offsets = [0, 80], sizes = [8, 8], strides = [1, 1]} : vector<8x96xf32> to vector<8x8xf32>
    %c0_43 = arith.constant 0 : index
    %c2_44 = arith.constant 2 : index
    %c0_45 = arith.constant 0 : index
    %c0_46 = arith.constant 0 : index
    %48 = vector.load %arg7[%c0_43, %c2_44, %c0_45, %c0_46] : memref<1x4x8x8xf32, #tpu.memory_space<vmem>>, vector<1x1x8x8xf32>
    %49 = vector.shape_cast %48 : vector<1x1x8x8xf32> to vector<8x8xf32>
    %50 = vector.shape_cast %47 : vector<8x8xf32> to vector<1x1x8x8xf32>
    tpu.vector_store %arg7[%c0_43, %c2_44, %c0_45, %c0_46], %50 {strides = array<i32>} : memref<1x4x8x8xf32, #tpu.memory_space<vmem>>, vector<1x1x8x8xf32>,
    %51 = vector.extract_strided_slice %6 {offsets = [0, 88], sizes = [8, 8], strides = [1, 1]} : vector<8x96xf32> to vector<8x8xf32>
    %c0_47 = arith.constant 0 : index
    %c3_48 = arith.constant 3 : index
    %c0_49 = arith.constant 0 : index
    %c0_50 = arith.constant 0 : index
    %52 = vector.load %arg7[%c0_47, %c3_48, %c0_49, %c0_50] : memref<1x4x8x8xf32, #tpu.memory_space<vmem>>, vector<1x1x8x8xf32>
    %53 = vector.shape_cast %52 : vector<1x1x8x8xf32> to vector<8x8xf32>
    %54 = vector.shape_cast %51 : vector<8x8xf32> to vector<1x1x8x8xf32>
    tpu.vector_store %arg7[%c0_47, %c3_48, %c0_49, %c0_50], %54 {strides = array<i32>} : memref<1x4x8x8xf32, #tpu.memory_space<vmem>>, vector<1x1x8x8xf32>,
    return
  }
  func.func @transform_0(%arg0: i32, %arg1: i32) -> (i32, i32, i32) {
    %c0_i32 = arith.constant 0 : i32
    %c0_i32_0 = arith.constant 0 : i32
    return %arg0, %arg1, %c0_i32 : i32, i32, i32
  }
  func.func @transform_1(%arg0: i32, %arg1: i32) -> (i32, i32) {
    %c0_i32 = arith.constant 0 : i32
    %c0_i32_0 = arith.constant 0 : i32
    %c0_i32_1 = arith.constant 0 : i32
    return %c0_i32, %c0_i32_0 : i32, i32
  }
  func.func @transform_2(%arg0: i32, %arg1: i32) -> (i32, i32) {
    %c0_i32 = arith.constant 0 : i32
    %c0_i32_0 = arith.constant 0 : i32
    %c0_i32_1 = arith.constant 0 : i32
    return %c0_i32, %c0_i32_0 : i32, i32
  }
  func.func @transform_3(%arg0: i32, %arg1: i32) -> (i32, i32, i32, i32) {
    %c0_i32 = arith.constant 0 : i32
    %c0_i32_0 = arith.constant 0 : i32
    %c0_i32_1 = arith.constant 0 : i32
    return %arg0, %c0_i32, %arg1, %c0_i32_0 : i32, i32, i32, i32
  }
  func.func @transform_4(%arg0: i32, %arg1: i32) -> (i32, i32, i32, i32) {
    %c0_i32 = arith.constant 0 : i32
    %c0_i32_0 = arith.constant 0 : i32
    %c0_i32_1 = arith.constant 0 : i32
    return %arg0, %c0_i32, %arg1, %c0_i32_0 : i32, i32, i32, i32
  }
  func.func @transform_5(%arg0: i32, %arg1: i32) -> (i32, i32, i32, i32) {
    %c0_i32 = arith.constant 0 : i32
    %c0_i32_0 = arith.constant 0 : i32
    %c0_i32_1 = arith.constant 0 : i32
    return %arg0, %c0_i32, %arg1, %c0_i32_0 : i32, i32, i32, i32
  }
}

</mosaic_0001>

<bundles_post_ra>
// kernel: tpu_custom_call.1
= control target key start
LH: loop header
LB: loop body
LE: loop exit
PB: predicated region body
PF: predicated region fallthrough
CT: control target
= control target key end

     0   :  { %s1228_s0 = inlined_call_operand.hbm [shape: f32[2,8,32], index: 0, kind: input, shape index: {}]   ;;  %s1229_s1 = inlined_call_operand.hbm [shape: f32[32,96], index: 1, kind: input, shape index: {}]   ;;  %s1230_s2 = inlined_call_operand.vmem [shape: f32[1,96], index: 2, kind: input, shape index: {}]   ;;  %s1231_s3 = inlined_call_operand.hbm [shape: f32[2,4,8,8], index: 3, kind: output, shape index: {0}]   ;;  %s1232_s4 = inlined_call_operand.hbm [shape: f32[2,4,8,8], index: 4, kind: output, shape index: {1}]   ;;  %s1233_s5 = inlined_call_operand.hbm [shape: f32[2,4,8,8], index: 5, kind: output, shape index: {2}]  }
   0x1   :  { %1237 = sst [smem:[#allocation15_spill]] %s1228_s0 }
   0x2   :  { %1238 = sst [smem:[#allocation16_spill]] %s1229_s1 }
   0x3   :  { %1239 = sst [smem:[#allocation17_spill]] %s1230_s2 }
   0x4   :  { %11 = vsyncpa [#allocation3], 0 }
   0x5   :  { %13 = vsyncpa [#allocation3 + $0x1], 0 }
   0x6   :  { %14 = vsyncpa [#allocation6], 0 }
   0x7   :  { %15 = vsyncpa [#allocation4], 0 }
   0x8   :  { %17 = vsyncpa [#allocation4 + $0x1], 0 }
   0x9   :  { %18 = vsyncpa [#allocation9], 0 }
   0xa   :  { %20 = vsyncpa [#allocation9 + $0x1], 0  ;;  %s1001_s18 = smov 0   ;;  %s1003_s19 = smov 0  }
   0xb   :  { %s1005_s20 = smov 0   ;;  %s1007_s21 = smov 0  }
   0xc   :  { %s1009_s22 = smov 0   ;;  %s1011_s23 = smov 0  }
   0xd LB: > { %s1032_s24 = sadd.s32 4294967295, %s953_s23   ;;  %p613_p0 = scmp.ge.s32.totalorder %s953_s23, 1  ;;  %s953_s23 = sphi %s1011_s23, %s26_s23   ;;  %s949_s22 = sphi %s1009_s22, %s1254_s22   ;;  %s945_s21 = sphi %s1007_s21, %s1253_s21   ;;  %s941_s20 = sphi %s1005_s20, %s1252_s20   ;;  %s937_s19 = sphi %s1003_s19, %s1251_s19   ;;  %s933_s18 = sphi %s1001_s18, %s1250_s18  }
   0xe   : > { %p61_p1 = scmp.eq.s32.totalorder %s1032_s24, 0  ;;  %p197_p2 = scmp.lt.s32.totalorder %s953_s23, 3 }
   0xf   : > { %s1240_s1 = sld [smem:[#allocation16_spill]]  ;;  %s955_s29 = smov [#allocation5]  }
  0x10   : > { %p1040_p3 = pnand %p613_p0, %p197_p2  ;;  %s210_s30 = sshll.u32 %s955_s29, 4  ;;  %s211_s30 = int_to_ptr.vmem [resolvable:$true] %s210_s30 }
  0x11   : > { %p615_p6 = scmp.ge.s32.totalorder %s953_s23, 2  ;;  %s956_s6 = smov 128  }
  0x12   : > { %p660_p4 = pneg %p1040_p3  ;;  %s957_s7 = smov 8  }
  0x13   : > { %s1234_s8 = sadd.s32 4294967294, %s953_s23   ;;  %s38_s9 = sadd.s32 1, %s949_s22 }
  0x14   : > { %p661_p5 = pnand %p660_p4, %p61_p1  ;;  %s47_s10 = sadd.s32 1, %s941_s20 }
  0x15   : > { %s208_s27 = sshll.u32 %s1240_s1, 4  ;;  %p40_p7 = scmp.ge.s32.totalorder %s38_s9, 2  ;;  %s209_s27 = int_to_ptr.hbm [resolvable:$true] %s208_s27 }
  0x16   : > { %663 = dma.hbm_to_vmem [thread:$0]  (!%p661_p5), %s209_s27, 512, %s211_s30, [#allocation6], %s956_s6, %s956_s6, %s957_s7  }
  0x17   : > { %p54_p8 = scmp.ne.s32.totalorder %s941_s20, %s937_s19  ;;  %p55_p9 = scmp.eq.s32.totalorder %s953_s23, 0 }
  0x18   : > { %p60_p10 = scmp.ne.s32.totalorder %s937_s19, %s933_s18  ;;  %s1256_s9 = smov (%p40_p7, %s38_s9), 0 }
  0x19   : > { %p1059_p11 = por %p55_p9, %p54_p8  ;;  %s42_s13 = ssub.s32 %s949_s22, %s1256_s9 }
  0x1a   : > { %p1065_p12 = por %p61_p1, %p60_p10  ;;  %p128_p13 = scmp.eq.s32.totalorder %s1032_s24, 1 }
  0x1b   : > { %p45_p0 = scmp.eq.s32.totalorder %s42_s13, 0  ;;  %p134_p2 = scmp.eq.s32.totalorder %s1234_s8, 1 }
  0x1c   : > { %p1074_p4 = por %p128_p13, %p54_p8  ;;  %p679_p5 = scmp.lt.s32.totalorder %s953_s23, 2 }
  0x1d   : > { %s1080_s15 = scalar_select %p45_p0, %s941_s20, %s47_s10  }
  0x1e   : > { %p1082_p7 = por %p134_p2, %p60_p10  ;;  %s227_s17 = sand.u32 1, %s941_s20  }
  0x1f   : > { %s616_s25 = sshll.u32 %s227_s17, 3  ;;  %s617_s26 = sshll.u32 %s949_s22, 3 }
  0x20   : > { %s1246_s0 = sld [smem:[#allocation15_spill]]  ;;  %s231_s6 = scalar_lea.vmem [#allocation2], %s616_s25 }
  0x21   : > { %s240_s7 = sshll.u32 %s231_s6, 4  ;;  %p665_p8 = pnand %p679_p5, %p1059_p11  ;;  %s241_s7 = int_to_ptr.vmem [resolvable:$true] %s240_s7 }
  0x22   : > { %s228_s10 = scalar_lea.sflag [#allocation3], %s227_s17  ;;  %s1096_s8 = sand.u32 (!%p1040_p3), 1, %s937_s19  }
  0x23   : > { %s619_s27 = sshll.u32 (!%p1040_p3), %s1096_s8, 3 }
  0x24   : > { %249 = sbr.rel (%p1040_p3) target bundleno = 336 (0x150), region = 32  ;;  %s255_s25 = scalar_lea.vmem (!%p1040_p3), [#allocation2], %s619_s27 }
  0x26   : > { %s236_s30 = scalar_lea.hbm %s1246_s0, %s617_s26  ;;  %s252_s26 = scalar_lea.sflag (!%p1040_p3), [#allocation3], %s1096_s8 }
  0x27   : > { %s238_s13 = sshll.u32 %s236_s30, 4  ;;  %s239_s13 = int_to_ptr.hbm [resolvable:$true] %s238_s13 }
  0x28   : > { %667 = dma.hbm_to_vmem [thread:$0]  (!%p665_p8), %s239_s13, 128, %s241_s7, %s228_s10  }
  0x29   : > { %916 = dma.done.wait (%p1065_p12), %s252_s26, 128  }
  0x2a   : > { %918 = vsyncadd (%p1065_p12), %s252_s26, 4294967168 }
  0x2b   : > { %920 = dma.done.wait (%p61_p1), [#allocation6], 512  }
  0x2c   : > { %922 = vsyncadd (%p61_p1), [#allocation6], 4294966784  ;;  %v302_v0 = vld [vmem:[#allocation5 + $0x18] sm:$0xff]  ;;  %v301_v1 = vld [vmem:[#allocation5 + $0x10] sm:$0xff]  ;;  %vm307_vm0 = vcmask 261120   ;;  %s1247_s2 = sld [smem:[#allocation17_spill]] }
  0x2d   : > { %323 = vmatpush.msra.mxu0 %v302_v0  ;;  %v300_v2 = vld [vmem:[#allocation5 + $0x8] sm:$0xff]  ;;  %v299_v3 = vld [vmem:[#allocation5] sm:$0xff]  ;;  %v298_v4 = vld [vmem:[%s255_s25] sm:$0xff]  ;;  %s1112_s12 = sshll.u32 %s1096_s8, 5  ;;  %vm331_vm1 = vcmask 64512   ;;  %s958_s17 = smov 120  }
  0x2e   : > { %s959_s29 = smov 80   ;;  %s1115_s30 = scalar_lea.vmem [#allocation7], %s1112_s12 }
  0x2f   : > { %324 = vmatpush.msra.mxu0 %v301_v1  ;;  %s960_s6 = smov 96   ;;  %s961_s7 = smov 112  }
  0x30   : > { %s962_s13 = smov 72   ;;  %s963_s10 = smov 88  }
  0x31   : > { %325 = vmatpush.msra.mxu0 %v300_v2  ;;  %s964_s27 = smov 56   ;;  %s965_s26 = smov 64  }
  0x32   : > { %v746_v5 = vld [vmem:[%s1247_s2] ss:$0 sm:$0xff]  ;;  %s966_s25 = smov 104   ;;  %s967_s28 = smov 40  }
  0x33   : > { %326 = vmatpush.msra.mxu0 %v299_v3  ;;  %s968_s11 = smov 48   ;;  %s827_s0 = scalar_lea.hbm %s1232_s4, 64 }
  0x34   : > { %624 = vmatmul.msk.f32.vlgmr.msra.gmra.mxu0 %vm307_vm0, %v298_v4 }
  0xb1   : > { %v328_v6 = vpop.f32.mrf.mxu0 }
  0xb2   : > { %v329_v7 = vadd.f32 %v746_v5, %v328_v6 }
  0xb4   : > { %334 = vrot.lane.b32.xlu2 %v329_v7, %s958_s17  ;;  %358 = vrot.lane.b32.xlu1 %v329_v7, %s959_s29  ;;  %332 = vst.msk [vmem:[%s1115_s30] sm:$0xff] %vm331_vm1, %v329_v7  ;;  %s1124_s17 = scalar_lea.vmem [#allocation10], %s1112_s12  ;;  %s1129_s29 = sshll.u32 %s945_s21, 5 }
  0xb5   : > { %349 = vrot.lane.b32.xlu0 %v329_v7, %s960_s6  ;;  %s290_s6 = scalar_lea.vmem [#allocation8], %s1112_s12 }
  0xbc   : > { %339 = vrot.lane.b32.xlu2 %v329_v7, %s961_s7  ;;  %363 = vrot.lane.b32.xlu1 %v329_v7, %s962_s13 }
  0xbd   : > { %353 = vrot.lane.b32.xlu0 %v329_v7, %s963_s10  ;;  %s428_s10 = scalar_lea.hbm %s1232_s4, %s1129_s29 }
  0xc4   : > { %372 = vrot.lane.b32.xlu2 %v329_v7, %s964_s27  ;;  %368 = vrot.lane.b32.xlu1 %v329_v7, %s965_s26  ;;  %s429_s27 = sshll.u32 %s290_s6, 4  ;;  %s392_s26 = sand.u32 1, %s1032_s24   ;;  %s430_s27 = int_to_ptr.vmem [resolvable:$true] %s429_s27 }
  0xc5   : > { %344 = vrot.lane.b32.xlu0 %v329_v7, %s966_s25  ;;  %s431_s25 = sshll.u32 %s428_s10, 4  ;;  %s432_s25 = int_to_ptr.hbm [resolvable:$true] %s431_s25 }
  0xc6   : > { %s821_s7 = sshra.s32 %s432_s25, 4  ;;  %s822_s7 = int_to_ptr.hbm [resolvable:$true] %s821_s7 }
  0xc7   : > { %s823_s13 = scalar_lea.hbm %s822_s7, 32  ;;  %p828_p10 = scmp.lt.s32.totalorder %s822_s7, %s1232_s4 }
  0xc8   : > { %p824_p1 = scmp.ne.s32.totalorder %s822_s7, %s823_s13  ;;  %p829_p11 = scmp.lt.s32.totalorder %s827_s0, %s823_s13 }
  0xca   : > { %p825_p3 = pnand %p824_p1, %p1074_p4  ;;  %p830_p12 = por %p829_p11, %p828_p10 }
  0xcc   : > { %382 = vrot.lane.b32.xlu1 %v329_v7, %s967_s28  ;;  %s410_s28 = scalar_lea.hbm %s1231_s3, %s1129_s29  ;;  %p826_p9 = pneg %p825_p3 }
  0xcd   : > { %377 = vrot.lane.b32.xlu0 %v329_v7, %s968_s11  ;;  %s1145_s11 = scalar_lea.sflag [#allocation9], %s392_s26 }
  0xce   : > { %p831_p13 = pnand %p830_p12, %p826_p9 }
 0x10e   : > { %v335_v8 = vpop.permute.xlu2 %334 }
 0x10f   : > { %625 = vst.msk [vmem:[%s1115_s30 + $0x8] sm:$0xff] %vm331_vm1, %v335_v8 }
 0x116   : > { %v340_v9 = vpop.permute.xlu2 %339 }
 0x117   : > { %626 = vst.msk [vmem:[%s1115_s30 + $0x10] sm:$0xff] %vm331_vm1, %v340_v9 }
 0x11e   : > { %v373_v10 = vpop.permute.xlu2 %372 }
 0x11f   : > { %631 = vst.msk [vmem:[%s1124_s17 + $0x8] sm:$0xff] %vm331_vm1, %v373_v10 }
 0x126   : > { %v359_v11 = vpop.permute.xlu1 %358 }
 0x127   : > { %629 = vst.msk [vmem:[%s290_s6 + $0x10] sm:$0xff] %vm331_vm1, %v359_v11  ;;  %v350_v12 = vpop.permute.xlu0 %349 }
 0x128   : > { %352 = vst.msk [vmem:[%s290_s6] sm:$0xff] %vm331_vm1, %v350_v12 }
 0x12e   : > { %v364_v13 = vpop.permute.xlu1 %363 }
 0x12f   : > { %630 = vst.msk [vmem:[%s290_s6 + $0x18] sm:$0xff] %vm331_vm1, %v364_v13  ;;  %v354_v14 = vpop.permute.xlu0 %353 }
 0x130   : > { %628 = vst.msk [vmem:[%s290_s6 + $0x8] sm:$0xff] %vm331_vm1, %v354_v14 }
 0x131   : > { %834 = shalt.err (!%p831_p13)
}
 0x132   : > { %s1235_s6 = smov 128   ;;  %s970_s26 = smov 8  }
 0x133   : > { %655 = dma.vmem_to_hbm [thread:$0]  (%p1074_p4), %s430_s27, 512, %s432_s25, %s1145_s11, %s1235_s6, %s1235_s6, %s970_s26  }
 0x134   : > { %s411_s1 = sshll.u32 %s1115_s30, 4  ;;  %s413_s0 = sshll.u32 %s410_s28, 4  ;;  %s412_s1 = int_to_ptr.vmem [resolvable:$true] %s411_s1  ;;  %s414_s0 = int_to_ptr.hbm [resolvable:$true] %s413_s0 }
 0x135   : > { %s446_s12 = scalar_lea.hbm %s1233_s5, %s1129_s29  ;;  %s388_s7 = scalar_lea.sflag [#allocation4], %s1096_s8 }
 0x136   : > { %v369_v15 = vpop.permute.xlu1 %368  ;;  %s849_s13 = sshra.s32 %s414_s0, 4  ;;  %s855_s28 = scalar_lea.hbm %s1231_s3, 64  ;;  %s850_s13 = int_to_ptr.hbm [resolvable:$true] %s849_s13 }
 0x137   : > { %371 = vst.msk [vmem:[%s1124_s17] sm:$0xff] %vm331_vm1, %v369_v15  ;;  %v345_v16 = vpop.permute.xlu0 %344  ;;  %s851_s24 = scalar_lea.hbm %s850_s13, 32  ;;  %p856_p8 = scmp.lt.s32.totalorder %s850_s13, %s1231_s3 }
 0x138   : > { %627 = vst.msk [vmem:[%s1115_s30 + $0x18] sm:$0xff] %vm331_vm1, %v345_v16  ;;  %p852_p0 = scmp.ne.s32.totalorder %s850_s13, %s851_s24  ;;  %p857_p1 = scmp.lt.s32.totalorder %s855_s28, %s851_s24 }
 0x13a   : > { %p853_p2 = pnand %p852_p0, %p1074_p4  ;;  %p858_p3 = por %p857_p1, %p856_p8 }
 0x13c   : > { %p854_p5 = pneg %p853_p2 }
 0x13e   : > { %p859_p9 = pnand %p858_p3, %p854_p5 }
 0x140   : > { %862 = shalt.err (!%p859_p9)
}
 0x141   : > { %s1248_s8 = smov 128   ;;  %s447_s30 = sshll.u32 %s1124_s17, 4  ;;  %v383_v17 = vpop.permute.xlu1 %382  ;;  %v378_v18 = vpop.permute.xlu0 %377  ;;  %s448_s30 = int_to_ptr.vmem [resolvable:$true] %s447_s30 }
 0x142   : > { %654 = dma.vmem_to_hbm [thread:$0]  (%p1074_p4), %s412_s1, 512, %s414_s0, %s388_s7, %s1248_s8, %s1248_s8, %s970_s26  }
 0x143   : > { %s449_s29 = sshll.u32 %s446_s12, 4  ;;  %633 = vst.msk [vmem:[%s1124_s17 + $0x18] sm:$0xff] %vm331_vm1, %v383_v17  ;;  %s883_s1 = scalar_lea.hbm %s1233_s5, 64  ;;  %s450_s29 = int_to_ptr.hbm [resolvable:$true] %s449_s29 }
 0x144   : > { %632 = vst.msk [vmem:[%s1124_s17 + $0x10] sm:$0xff] %vm331_vm1, %v378_v18  ;;  %s877_s6 = sshra.s32 %s450_s29, 4  ;;  %s878_s6 = int_to_ptr.hbm [resolvable:$true] %s877_s6 }
 0x145   : > { %s879_s2 = scalar_lea.hbm %s878_s6, 32  ;;  %p884_p13 = scmp.lt.s32.totalorder %s878_s6, %s1233_s5 }
 0x146   : > { %p880_p10 = scmp.ne.s32.totalorder %s878_s6, %s879_s2  ;;  %p885_p0 = scmp.lt.s32.totalorder %s883_s1, %s879_s2 }
 0x148   : > { %p881_p11 = pnand %p880_p10, %p1074_p4  ;;  %p886_p2 = por %p885_p0, %p884_p13 }
 0x14a   : > { %p882_p12 = pneg %p881_p11 }
 0x14c   : > { %p887_p5 = pnand %p886_p2, %p882_p12 }
 0x14e   : > { %890 = shalt.err (!%p887_p5)
}
 0x14f   : > { %656 = dma.vmem_to_hbm [thread:$0]  (%p1074_p4), %s448_s30, 512, %s450_s29, %s1145_s11, %s1248_s8, %s1248_s8, %s970_s26  }
 0x150 PF: > { %s464_s17 = sand.u32 1, %s933_s18   ;;  %p669_p8 = pnand %p615_p6, %p1082_p7 }
 0x151   : > { %s465_s7 = scalar_lea.sflag [#allocation4], %s464_s17 }
 0x152   : > { %p670_p1 = pneg %p669_p8 }
 0x154   : > { %924 = dma.done.wait (%p670_p1), %s465_s7, 512  }
 0x155   : > { %926 = vsyncadd (%p670_p1), %s465_s7, 4294966784  ;;  %s1249_s24 = sadd.s32 4294967294, %s953_s23  }
 0x156   : > { %s474_s14 = sand.u32 1, %s1249_s24  }
 0x157   : > { %s475_s27 = scalar_lea.sflag [#allocation9], %s474_s14 }
 0x158   : > { %928 = dma.done.wait (%p670_p1), %s475_s27, 1024  }
 0x159   : > { %930 = vsyncadd (%p670_p1), %s475_s27, 4294966272  ;;  %s26_s23 = sadd.s32 1, %s953_s23   ;;  %s1250_s18 = smov %s937_s19 }
 0x15a   : > { %p23_p4 = scmp.ge.s32.totalorder %s26_s23, 4   ;;  %s1251_s19 = smov %s941_s20 }
 0x15b   : > { %s1252_s20 = smov %s1080_s15  ;;  %s1253_s21 = smov %s949_s22 }
 0x15c   : > { %s1254_s22 = smov %s1256_s9  ;;  %25 = sbr.rel (!%p23_p4) target bundleno = 13 (0xd), region = 122 }
 0x161   :  { %491 = vsyncpa [#allocation3], 1 }
 0x162   :  { %493 = vsyncpa [#allocation3 + $0x1], 1 }
 0x163   :  { %494 = vsyncpa [#allocation6], 1 }
 0x164   :  { %495 = vsyncpa [#allocation4], 1 }
 0x165   :  { %497 = vsyncpa [#allocation4 + $0x1], 1 }
 0x166   :  { %498 = vsyncpa [#allocation9], 1 }
 0x167   :  { %500 = vsyncpa [#allocation9 + $0x1], 1 }

</bundles_post_ra>
